<compile_context>
chip_gen: v7x
topology: tpu7x:2x2x1
jax: 0.10.0
libtpu: 0.0.40
codegen_flags: <defaults>
</compile_context>

<pallas_src>
import jax
import jax.numpy as jnp
from jax.experimental import pallas as pl
from jax.experimental.pallas import tpu as pltpu

# fp32-faithful matmuls everywhere (otherwise the reference einsums run at the
# TPU default bf16 MXU precision and dominate the comparison error).
jax.config.update("jax_default_matmul_precision", "highest")


def temporal_attention_kernel(z_ref, m_ref, out_ref):
    # z_ref  : (bt, T, D)  block of sequences (VMEM)
    # m_ref  : (D, D)      M = W^T @ W, resident across the grid
    # out_ref: (bt, D)
    t = z_ref.shape[1]

    z = z_ref[...]                                     # (bt, T, D)
    m = m_ref[...]                                     # (D, D)

    # q_tilde[b] = M @ z[b, -1]; M is symmetric so this is z_last @ M.
    z_last = z[:, t - 1, :]                            # (bt, D)
    q_t = jnp.dot(z_last, m, preferred_element_type=jnp.float32)    # (bt, D)

    # scores[b, t] = <z[b, t], q_tilde[b]>  (== <h[b, t], h[b, -1]>)
    scores = jnp.sum(z * q_t[:, None, :], axis=-1, keepdims=True)   # (bt, T, 1)

    # Numerically stable softmax over the time axis (exact division).
    scores = scores - jnp.max(scores, axis=1, keepdims=True)
    e = jnp.exp(scores)
    lam = e / jnp.sum(e, axis=1, keepdims=True)                      # (bt, T, 1)

    # output[b] = sum_t lam[b, t] * z[b, t]  (VPU multiply + sublane reduce)
    out_ref[...] = jnp.sum(lam * z, axis=1).astype(out_ref.dtype)


def _vmem_capacity_bytes():
    """Physical VMEM per core (v5e/v6e: 128 MiB, v7x: 64 MiB); safe fallback."""
    try:
        return int(pltpu.get_tpu_info().vmem_capacity_bytes)
    except Exception:
        return 64 << 20  # conservative (v7x-sized) default


def _choose_bt(B, T, D, vmem_bytes):
    """Sequences per grid step (multiple of 8).

    The kernel is HBM-bandwidth bound, so the z block is sized by BYTES
    (~3 MiB on 128 MiB-VMEM parts, ~1.5 MiB on v7x's 64 MiB), then shrunk so
    the "parallel" batch grid has >= 2 (preferably an even number of) steps,
    letting both v7x TensorCores take work.
    """
    seq_bytes = T * D * 4
    target = (3 << 20) if vmem_bytes >= (100 << 20) else (3 << 19)
    bt = max(8, (target // seq_bytes) // 8 * 8)
    # Keep the ~4x-block per-step footprint well inside VMEM.
    while bt > 8 and 4 * bt * seq_bytes > int(0.6 * vmem_bytes):
        bt = max(8, (bt // 2) // 8 * 8)
    b_pad = -(-B // 8) * 8
    bt = min(bt, b_pad)
    if b_pad > 8:
        # At least two grid steps when the batch allows.
        while bt > 8 and -(-B // bt) < 2:
            bt = max(8, (bt // 2) // 8 * 8)
        # Prefer an even number of steps (v7x has 2 TensorCores); accept at
        # most a ~2x shrink to get there.
        cand = bt
        while cand > 8 and (-(-B // cand)) % 2 == 1 and cand * 2 > bt:
            cand -= 8
        if (-(-B // cand)) % 2 == 0:
            bt = cand
    return bt


def temporal_attention(z, weight, *, bt=None):
    """z: (B, T, D) float32; weight: (D, D) PyTorch nn.Linear weight (out, in)."""
    B, T, D = z.shape

    # M = W^T W, built with a dim-0 contraction (no explicit transpose op).
    m = jax.lax.dot_general(weight, weight, (((0,), (0,)), ((), ())),
                            preferred_element_type=jnp.float32)

    vmem_cap = _vmem_capacity_bytes()
    if bt is None:
        bt = _choose_bt(B, T, D, vmem_cap)
    assert bt % 8 == 0, "bt must be a multiple of 8 (sublane-dense blocks)"

    num_blocks = pl.cdiv(B, bt)
    Bp = num_blocks * bt
    if Bp != B:
        # Zero-padded sequences give a uniform softmax over zeros -> zero
        # output rows, sliced away below (no NaNs).
        z = jnp.pad(z, ((0, Bp - B), (0, 0), (0, 0)))

    # Per-step VMEM footprint: double-buffered z and out blocks, resident M,
    # plus room for the (bt, T, D)-sized elementwise intermediates / scratch.
    z_block_bytes = bt * T * D * 4
    out_block_bytes = bt * D * 4
    footprint = 4 * z_block_bytes + 4 * out_block_bytes + 2 * D * D * 4 + (2 << 20)
    vmem_limit = int(max(footprint, 16 << 20))

    cost = pl.CostEstimate(
        flops=2 * Bp * D * D + 6 * Bp * T * D,
        transcendentals=Bp * T,
        bytes_accessed=4 * (Bp * T * D + D * D + Bp * D),
    )

    out = pl.pallas_call(
        temporal_attention_kernel,
        out_shape=jax.ShapeDtypeStruct((Bp, D), z.dtype),
        grid_spec=pltpu.PrefetchScalarGridSpec(
            num_scalar_prefetch=0,
            grid=(num_blocks,),
            in_specs=[
                pl.BlockSpec((bt, T, D), lambda b: (b, 0, 0)),
                pl.BlockSpec((D, D), lambda b: (0, 0)),
            ],
            out_specs=pl.BlockSpec((bt, D), lambda b: (b, 0)),
        ),
        compiler_params=pltpu.CompilerParams(
            dimension_semantics=("parallel",),
            vmem_limit_bytes=vmem_limit,
        ),
        cost_estimate=cost,
    )(z, m)

    return out[:B]


def temporal_attention_ref(z, weight):
    """Plain-JAX forward matching the PyTorch module exactly."""
    h = jnp.einsum("btd,ed->bte", z, weight)              # Linear, no bias
    query = h[:, -1, :]                                   # (B, D)
    lam = jnp.einsum("bte,be->bt", h, query)              # (B, T)
    lam = jax.nn.softmax(lam, axis=1)                     # softmax over time
    return jnp.einsum("bt,btd->bd", lam, z)               # (B, D)


if __name__ == "__main__":
    key = jax.random.PRNGKey(0)
    B, T, D = 16, 8, 32  # batch, seq, d_model (small; exercises 2 grid steps)

    kz, kw = jax.random.split(key)
    z = jax.random.normal(kz, (B, T, D), dtype=jnp.float32)
    # Deterministic init of nn.Linear(d_model, d_model, bias=False) weight (D, D)
    bound = 1.0 / (D ** 0.5)
    weight = jax.random.uniform(kw, (D, D), dtype=jnp.float32,
                                minval=-bound, maxval=bound)

    out = jax.block_until_ready(temporal_attention(z, weight))
    ref = temporal_attention_ref(z, weight)
    assert out.shape == (B, D)
    assert jnp.allclose(out, ref, atol=1e-3, rtol=1e-3), "mismatch vs reference"

    # Batch that is not a multiple of the per-step tile (padding path).
    out_small = jax.block_until_ready(temporal_attention(z[:3], weight))
    ref_small = temporal_attention_ref(z[:3], weight)
    assert out_small.shape == (3, D)
    assert jnp.allclose(out_small, ref_small, atol=1e-3, rtol=1e-3), \
        "mismatch (padded batch)"

    print("KERNEL_OK")
</pallas_src>

<mosaic_0001>
module attributes {stable_mosaic.version = 11 : i64} {
  func.func @temporal_attention_kernel(%arg0: i32, %arg1: memref<8x8x32xf32, #tpu.memory_space<vmem>>, %arg2: memref<32x32xf32, #tpu.memory_space<vmem>>, %arg3: memref<8x32xf32, #tpu.memory_space<vmem>>) attributes {dimension_semantics = [#tpu.dimension_semantics<parallel>], iteration_bounds = array<i64: 2>, scalar_prefetch = 0 : i64, scratch_operands = 0 : i64, tpu.core_type = #tpu.core_type<tc>, window_params = [{transform_indices = @transform_0, window_bounds = array<i64: 8, 8, 32>}, {pipeline_mode = #tpu.pipeline_mode<synchronous>, transform_indices = @transform_1, window_bounds = array<i64: 32, 32>}, {transform_indices = @transform_2, window_bounds = array<i64: 8, 32>}]} {
    %c0 = arith.constant 0 : index
    %c0_0 = arith.constant 0 : index
    %c0_1 = arith.constant 0 : index
    %0 = vector.load %arg1[%c0, %c0_0, %c0_1] : memref<8x8x32xf32, #tpu.memory_space<vmem>>, vector<8x8x32xf32>
    %c0_2 = arith.constant 0 : index
    %c0_3 = arith.constant 0 : index
    %1 = vector.load %arg2[%c0_2, %c0_3] : memref<32x32xf32, #tpu.memory_space<vmem>>, vector<32x32xf32>
    %2 = vector.extract_strided_slice %0 {offsets = [0, 7, 0], sizes = [8, 1, 32], strides = [1, 1, 1]} : vector<8x8x32xf32> to vector<8x1x32xf32>
    %3 = vector.shape_cast %2 : vector<8x1x32xf32> to vector<8x32xf32>
    %cst = arith.constant dense<0.000000e+00> : vector<8x32xf32>
    %4 = tpu.matmul %3, %1, %cst {dimension_numbers = #tpu.dot_dimension_numbers<[1], [0], [0], [1], [0, 0, 1, 1], [], []>, precision = #tpu.contract_precision<fp32>} : vector<8x32xf32>, vector<32x32xf32>, vector<8x32xf32> -> vector<8x32xf32>
    %5 = vector.shape_cast %4 : vector<8x32xf32> to vector<8x1x32xf32>
    %6 = vector.broadcast %5 : vector<8x1x32xf32> to vector<8x8x32xf32>
    %7 = arith.mulf %0, %6 : vector<8x8x32xf32>
    %cst_4 = arith.constant dense<0.000000e+00> : vector<8x8xf32>
    %8 = vector.multi_reduction <add>, %7, %cst_4 [2] : vector<8x8x32xf32> to vector<8x8xf32>
    %9 = vector.shape_cast %8 : vector<8x8xf32> to vector<8x8x1xf32>
    %cst_5 = arith.constant dense<0xFF800000> : vector<8x1xf32>
    %10 = vector.multi_reduction <maximumf>, %9, %cst_5 [1] : vector<8x8x1xf32> to vector<8x1xf32>
    %11 = vector.shape_cast %10 : vector<8x1xf32> to vector<8x1x1xf32>
    %12 = vector.broadcast %11 : vector<8x1x1xf32> to vector<8x8x1xf32>
    %13 = arith.subf %9, %12 : vector<8x8x1xf32>
    %14 = math.exp %13 : vector<8x8x1xf32>
    %cst_6 = arith.constant dense<0.000000e+00> : vector<8x1xf32>
    %15 = vector.multi_reduction <add>, %14, %cst_6 [1] : vector<8x8x1xf32> to vector<8x1xf32>
    %16 = vector.shape_cast %15 : vector<8x1xf32> to vector<8x1x1xf32>
    %17 = vector.broadcast %16 : vector<8x1x1xf32> to vector<8x8x1xf32>
    %18 = arith.divf %14, %17 : vector<8x8x1xf32>
    %19 = vector.broadcast %18 : vector<8x8x1xf32> to vector<8x8x32xf32>
    %20 = arith.mulf %19, %0 : vector<8x8x32xf32>
    %cst_7 = arith.constant dense<0.000000e+00> : vector<8x32xf32>
    %21 = vector.multi_reduction <add>, %20, %cst_7 [1] : vector<8x8x32xf32> to vector<8x32xf32>
    %c0_8 = arith.constant 0 : index
    %c0_9 = arith.constant 0 : index
    %22 = vector.load %arg3[%c0_8, %c0_9] : memref<8x32xf32, #tpu.memory_space<vmem>>, vector<8x32xf32>
    tpu.vector_store %arg3[%c0_8, %c0_9], %21 {strides = array<i32>} : memref<8x32xf32, #tpu.memory_space<vmem>>, vector<8x32xf32>,
    return
  }
  func.func @transform_0(%arg0: i32) -> (i32, i32, i32) {
    %c0_i32 = arith.constant 0 : i32
    %c0_i32_0 = arith.constant 0 : i32
    %c0_i32_1 = arith.constant 0 : i32
    return %arg0, %c0_i32, %c0_i32_0 : i32, i32, i32
  }
  func.func @transform_1(%arg0: i32) -> (i32, i32) {
    %c0_i32 = arith.constant 0 : i32
    %c0_i32_0 = arith.constant 0 : i32
    %c0_i32_1 = arith.constant 0 : i32
    return %c0_i32, %c0_i32_0 : i32, i32
  }
  func.func @transform_2(%arg0: i32) -> (i32, i32) {
    %c0_i32 = arith.constant 0 : i32
    %c0_i32_0 = arith.constant 0 : i32
    return %arg0, %c0_i32 : i32, i32
  }
}

</mosaic_0001>

<bundles_post_ra>
// kernel: tpu_custom_call.1
= control target key start
LH: loop header
LB: loop body
LE: loop exit
PB: predicated region body
PF: predicated region fallthrough
CT: control target
= control target key end

     0   :  { %7 = vsyncpa [#allocation3], 0  ;;  %s1918_s0 = inlined_call_operand.hbm [shape: f32[16,8,32], index: 0, kind: input, shape index: {}]   ;;  %s1919_s1 = inlined_call_operand.hbm [shape: f32[32,32], index: 1, kind: input, shape index: {}]   ;;  %s1920_s2 = inlined_call_operand.hbm [shape: f32[16,32], index: 2, kind: output, shape index: {}]  }
   0x1   :  { %9 = vsyncpa [#allocation3 + $0x1], 0 }
   0x2   :  { %10 = vsyncpa [#allocation6], 0 }
   0x3   :  { %11 = vsyncpa [#allocation4], 0 }
   0x4   :  { %13 = vsyncpa [#allocation4 + $0x1], 0  ;;  %s1546_s9 = smov 0   ;;  %s1548_s10 = smov 0  }
   0x5   :  { %s1550_s11 = smov 0   ;;  %s1552_s12 = smov 0  }
   0x6 LB: > { %s1567_s13 = sadd.s32 4294967295, %s1520_s12   ;;  %s1140_s14 = sadd.s32 4294967294, %s1520_s12   ;;  %s1520_s12 = sphi %s1552_s12, %s1940_s12   ;;  %s1516_s11 = sphi %s1550_s11, %s1939_s11   ;;  %s1512_s10 = sphi %s1548_s10, %s1938_s10   ;;  %s1508_s9 = sphi %s1546_s9, %s1937_s9  }
   0x7   : > { %p39_p0 = scmp.ne.s32.totalorder %s1512_s10, %s1508_s9  ;;  %p1921_p1 = scmp.eq.s32.totalorder %s1567_s13, 0 }
   0x8   : > { %p90_p3 = scmp.eq.s32.totalorder %s1140_s14, 1  ;;  %p1141_p5 = scmp.ge.s32.totalorder %s1520_s12, 1 }
   0x9   : > { %p1576_p4 = por %p1921_p1, %p39_p0  ;;  %p97_p7 = scmp.lt.s32.totalorder %s1520_s12, 3 }
   0xa   : > { %p1581_p6 = por %p90_p3, %p39_p0  ;;  %s1522_s18 = smov [#allocation5]  }
   0xb   : > { %s1924_s15 = scalar_select %p1576_p4, 1, 0 }
   0xc   : > { %s1925_s16 = scalar_select %p1581_p6, 1, 0 }
   0xd   : > { %p1586_p8 = pnand %p1141_p5, %p97_p7  ;;  %s109_s19 = sshll.u32 %s1522_s18, 4  ;;  %s1590_s19 = int_to_ptr.vmem [resolvable:$true] %s109_s19 }
   0xe   : > { %s1602_s21 = sadd.s32 1, %s1520_s12   ;;  %s26_s22 = sadd.s32 1, %s1516_s11 }
   0xf   : > { %s1926_s17 = scalar_select %p1586_p8, 1, 0 }
  0x10   : > { %p1305_p9 = pneg %p1586_p8  ;;  %s23_s23 = ssub.s32 %s1520_s12, %s1602_s21 }
  0x11   : > { %s1392_s26 = scalar_lea.hbm %s1919_s1, 512 }
  0x12   : > { %p1597_p11 = pnand %p1305_p9, %p1921_p1  ;;  %p1393_p12 = scmp.ne.s32.totalorder %s1919_s1, %s1392_s26 }
  0x13   : > { %p1399_p5 = scmp.lt.u32.totalorder %s1392_s26, %s1919_s1 }
  0x14   : > { %p1394_p13 = pneg %p1597_p11 }
  0x16   : > { %p1395_p0 = pnand %p1394_p13, %p1393_p12 }
  0x18   : > { %p1396_p3 = pneg %p1395_p0 }
  0x1a   : > { %p1401_p7 = pnand %p1399_p5, %p1396_p3 }
  0x1c   : > { %1404 = shalt.err (!%p1401_p7)
}
  0x1d   : > { %s1405_s3 = scalar_lea.vmem %s1590_s19, 512  ;;  %p1413_p2 = scmp.lt.s32.totalorder %s1590_s19, %s1590_s19 }
  0x1e   : > { %p1406_p9 = scmp.ne.s32.totalorder %s1590_s19, %s1405_s3  ;;  %p1414_p6 = scmp.lt.s32.totalorder %s1405_s3, %s1405_s3 }
  0x20   : > { %p1408_p10 = pnand %p1406_p9, %p1394_p13  ;;  %p1415_p4 = por %p1414_p6, %p1413_p2 }
  0x22   : > { %p1409_p1 = pneg %p1408_p10 }
  0x24   : > { %p1416_p8 = pnand %p1415_p4, %p1409_p1 }
  0x26   : > { %1419 = shalt.err (!%p1416_p8)
}
  0x27   : > { %s1523_s4 = smov 128   ;;  %s1524_s5 = smov 8  }
  0x28   : > { %1308 = dma.hbm_to_vmem [thread:$0]  (!%p1597_p11), %s1919_s1, 512, %s1590_s19, [#allocation6], %s1523_s4, %s1523_s4, %s1524_s5  }
  0x29   : > { %p24_p1 = scmp.eq.s32.totalorder %s23_s23, 0  ;;  %p33_p2 = scmp.ne.s32.totalorder %s1516_s11, %s1512_s10 }
  0x2a   : > { %p34_p4 = scmp.eq.s32.totalorder %s1520_s12, 0  ;;  %p1318_p6 = scmp.lt.s32.totalorder %s1520_s12, 2 }
  0x2b   : > { %s1636_s8 = scalar_select %p24_p1, %s1516_s11, %s26_s22  }
  0x2c   : > { %p35_p8 = por %p34_p4, %p33_p2  ;;  %p1928_p10 = scmp.eq.s32.totalorder %s1567_s13, 1 }
  0x2d   : > { %s123_s18 = sand.u32 1, %s1516_s11   ;;  %s1155_s20 = sshll.u32 %s1520_s12, 10 }
  0x2e   : > { %p1640_p12 = por %p1928_p10, %p33_p2  ;;  %s1144_s24 = sshll.u32 %s123_s18, 6 }
  0x2f   : > { %s1649_s27 = scalar_lea.hbm %s1918_s0, %s1155_s20  ;;  %s127_s19 = scalar_lea.vmem [#allocation2], %s1144_s24 }
  0x30   : > { %s134_s22 = sshll.u32 %s127_s19, 4  ;;  %p1651_p11 = pnand %p1318_p6, %p35_p8  ;;  %s1655_s22 = int_to_ptr.vmem [resolvable:$true] %s134_s22 }
  0x31   : > { %s1657_s28 = scalar_lea.sflag [#allocation3], %s123_s18  ;;  %s1420_s29 = scalar_lea.hbm %s1649_s27, 1024 }
  0x32   : > { %p1421_p13 = scmp.ne.s32.totalorder %s1649_s27, %s1420_s29  ;;  %p1422_p0 = pneg %p1651_p11 }
  0x33   : > { %s1425_s6 = scalar_lea.hbm %s1918_s0, 2048  ;;  %p1426_p7 = scmp.lt.u32.totalorder %s1649_s27, %s1918_s0 }
  0x34   : > { %p1423_p3 = pnand %p1422_p0, %p1421_p13  ;;  %p1427_p9 = scmp.lt.u32.totalorder %s1425_s6, %s1420_s29 }
  0x35   : > { %p1429_p2 = scmp.lt.u32.totalorder %s1420_s29, %s1649_s27 }
  0x36   : > { %p1424_p5 = pneg %p1423_p3  ;;  %p1428_p1 = por %p1427_p9, %p1426_p7 }
  0x38   : > { %p1430_p4 = por %p1429_p2, %p1428_p1 }
  0x3a   : > { %p1431_p6 = pnand %p1430_p4, %p1424_p5 }
  0x3c   : > { %1434 = shalt.err (!%p1431_p6)
}
  0x3d   : > { %s1435_s18 = scalar_lea.vmem %s1655_s22, 1024  ;;  %s1525_s24 = smov [#allocation2]  }
  0x3e   : > { %p1436_p8 = scmp.ne.s32.totalorder %s1655_s22, %s1435_s18  ;;  %s1440_s25 = sshll.u32 %s1525_s24, 4  ;;  %s1441_s25 = int_to_ptr.vmem [resolvable:$false] %s1440_s25 }
  0x3f   : > { %s1442_s26 = scalar_lea.vmem %s1441_s25, 2048  ;;  %p1443_p3 = scmp.lt.s32.totalorder %s1655_s22, %s1441_s25 }
  0x40   : > { %p1438_p10 = pnand %p1436_p8, %p1422_p0  ;;  %p1444_p7 = scmp.lt.s32.totalorder %s1442_s26, %s1435_s18 }
  0x42   : > { %p1439_p13 = pneg %p1438_p10  ;;  %p1445_p9 = por %p1444_p7, %p1443_p3 }
  0x44   : > { %p1446_p1 = pnand %p1445_p9, %p1439_p13 }
  0x46   : > { %1449 = shalt.err (!%p1446_p1)
}
  0x47   : > { %1312 = dma.hbm_to_vmem [thread:$0]  (!%p1651_p11), %s1649_s27, 1024, %s1655_s22, %s1657_s28, %s1523_s4, %s1523_s4, %s1524_s5  }
  0x48   : > { %p1931_p0 = scmp.ne.s32.totalorder %s1926_s17, 0 }
  0x49   : > { %s1691_s19 = sand.u32 (!%p1931_p0), 1, %s1512_s10   ;;  %p1932_p5 = scmp.ne.s32.totalorder (!%p1931_p0), %s1924_s15, 0 }
  0x4a   : > { %146 = sbr.rel (%p1931_p0) target bundleno = 586 (0x24a), region = 28  ;;  %s1148_s29 = sshll.u32 (!%p1931_p0), %s1691_s19, 6 }
  0x4b   : > { %s149_s30 = scalar_lea.sflag (!%p1931_p0), [#allocation3], %s1691_s19  ;;  %s1695_s3 = scalar_lea.vmem (!%p1931_p0), [#allocation2], %s1148_s29 }
  0x51   : > { %1495 = dma.done.wait (%p1932_p5), %s149_s30, 1024  }
  0x52   : > { %1497 = vsyncadd (%p1932_p5), %s149_s30, 4294966272  ;;  %p1933_p11 = scmp.eq.s32.totalorder %s1567_s13, 0 }
  0x54   : > { %1499 = dma.done.wait (%p1933_p11), [#allocation6], 512   ;;  %p1934_p2 = pmov %p1933_p11 }
  0x55   : > { %v1526_v0 = vmov 0.0|0.0   ;;  %vm1527_vm0 = vmmov 0   ;;  %v1528_v1 = vmov 0.0   ;;  %v186_v2 = vld [vmem:[#allocation5] sm:$0xff]  ;;  %v187_v3 = vld [vmem:[#allocation5 + $0x8] sm:$0xff]  ;;  %v188_v4 = vld [vmem:[#allocation5 + $0x10] sm:$0xff] }
  0x56   : > { %1501 = vsyncadd (%p1934_p2), [#allocation6], 4294966784  ;;  %1270 = vmatprep.subr.bf16.mxu0 %v1526_v0  ;;  %1252 = vmatprep.subr.bf16.mxu1 %v1526_v0  ;;  %vm200_vm1 = vcmask 1041409   ;;  %v223_v5 = vand.u32 4294901760, %v186_v2  ;;  %v226_v6 = vand.u32 4294901760, %v187_v3  ;;  %v189_v7 = vld [vmem:[#allocation5 + $0x18] sm:$0xff] }
  0x57   : > { %1227 = vmatprep.mubr.msk.f32.mxu0 %vm1527_vm0, %v1528_v1  ;;  %1194 = vmatprep.mubr.msk.f32.mxu1 %vm1527_vm0, %v1528_v1  ;;  %v229_v8 = vand.u32 4294901760, %v188_v4  ;;  %v1712_v9 = vld [vmem:[%s1695_s3] sm:$0xff]  ;;  %v1715_v10 = vld [vmem:[%s1695_s3 + $0x8] sm:$0xff]  ;;  %v232_v11 = vand.u32 4294901760, %v189_v7  ;;  %v1718_v12 = vld [vmem:[%s1695_s3 + $0x10] sm:$0xff]  ;;  %vm203_vm2 = vcmask 1042434  }
  0x58   : > { %v1721_v13 = vld [vmem:[%s1695_s3 + $0x18] sm:$0xff]  ;;  %v1724_v14 = vld [vmem:[%s1695_s3 + $0x20] sm:$0xff]  ;;  %v198_v15 = vrot.slane %v1712_v9, 7  ;;  %v199_v16 = vrot.slane %v1715_v10, 6  ;;  %v1728_v17 = vpack.c.bf16 %v226_v6, %v223_v5  ;;  %v1731_v18 = vld [vmem:[%s1695_s3 + $0x28] sm:$0xff]  ;;  %vm206_vm3 = vcmask 1043459  }
  0x59   : > { %v1734_v19 = vld [vmem:[%s1695_s3 + $0x30] sm:$0xff]  ;;  %vm209_vm4 = vcmask 1044484   ;;  %v1736_v20 = vsub.f32 %v186_v2, %v223_v5  ;;  %v1738_v21 = vsub.f32 %v187_v3, %v226_v6  ;;  %v202_v23 = vrot.slane %v1718_v12, 5  ;;  %v1755_v33 = vld [vmem:[%s1695_s3 + $0x38] sm:$0xff]  ;;  %s1150_s15 = sshll.u32 %s1691_s19, 3  ;;  %s1152_s17 = sshll.u32 %s1567_s13, 7 }
  0x5a   : > { %v201_v22 = vsel %vm200_vm1, %v199_v16, %v198_v15  ;;  %1272 = vmatpush3.bf16.msra.mxu0 %v1728_v17  ;;  %1254 = vmatpush3.bf16.msra.mxu1 %v1728_v17  ;;  %v1744_v24 = vpack.c.bf16 %v232_v11, %v229_v8  ;;  %v205_v25 = vrot.slane %v1721_v13, 4  ;;  %v208_v26 = vrot.slane %v1724_v14, 3  ;;  %s176_s4 = scalar_lea.vmem [#allocation7], %s1150_s15  ;;  %s1872_s23 = scalar_lea.hbm %s1920_s2, %s1152_s17 }
  0x5b   : > { %v211_v27 = vrot.slane %v1731_v18, 2  ;;  %1273 = vmatprep.subr.bf16.mxu0 %v1526_v0  ;;  %1255 = vmatprep.subr.bf16.mxu1 %v1526_v0  ;;  %v204_v28 = vsel %vm203_vm2, %v202_v23, %v201_v22  ;;  %vm212_vm5 = vcmask 1045509   ;;  %v214_v29 = vrot.slane %v1734_v19, 1  ;;  %s1060_s5 = sshll.u32 %s176_s4, 4  ;;  %s1047_s13 = scalar_lea.sflag [#allocation4], %s1691_s19  ;;  %s1874_s5 = int_to_ptr.vmem [resolvable:$true] %s1060_s5 }
  0x5c   : > { %v317_v30 = vsub.f32 %v188_v4, %v229_v8  ;;  %v207_v31 = vsel %vm206_vm3, %v205_v25, %v204_v28  ;;  %vm215_vm6 = vcmask 1046534   ;;  %vm217_vm7 = vcmask 1047559   ;;  %s1450_s28 = scalar_lea.vmem %s1874_s5, 128  ;;  %s1530_s6 = smov [#allocation7]  }
  0x5d   : > { %v324_v32 = vsub.f32 %v189_v7, %v232_v11  ;;  %v210_v34 = vsel %vm209_vm4, %v208_v26, %v207_v31  ;;  %v304_v35 = vand.u32 4294901760, %v1736_v20  ;;  %v311_v36 = vand.u32 4294901760, %v1738_v21  ;;  %p1451_p4 = scmp.ne.s32.totalorder %s1874_s5, %s1450_s28  ;;  %s1454_s7 = sshll.u32 %s1530_s6, 4  ;;  %s1455_s7 = int_to_ptr.vmem [resolvable:$false] %s1454_s7 }
  0x5e   : > { %1275 = vmatpush3.bf16.msra.mxu0 %v1744_v24  ;;  %1257 = vmatpush3.bf16.msra.mxu1 %v1744_v24  ;;  %v213_v37 = vsel %vm212_vm5, %v211_v27, %v210_v34  ;;  %vm219_vm8 = vcmask 261120   ;;  %v318_v40 = vand.u32 4294901760, %v317_v30  ;;  %v1265_v60 = vpack.c.bf16 %v1738_v21, %v1736_v20  ;;  %s1456_s20 = scalar_lea.vmem %s1455_s7, 256  ;;  %p1457_p10 = scmp.lt.s32.totalorder %s1874_s5, %s1455_s7 }
  0x5f   : > { %v216_v38 = vsel %vm215_vm6, %v214_v29, %v213_v37  ;;  %1276 = vmatprep.subr.bf16.mxu0 %v1526_v0  ;;  %1258 = vmatprep.subr.bf16.mxu1 %v1526_v0  ;;  %v305_v42 = vsub.f32 %v1736_v20, %v304_v35  ;;  %v312_v43 = vsub.f32 %v1738_v21, %v311_v36  ;;  %v325_v44 = vand.u32 4294901760, %v324_v32  ;;  %p1452_p6 = pnand %p1451_p4, %p1640_p12  ;;  %p1458_p13 = scmp.lt.s32.totalorder %s1456_s20, %s1450_s28 }
  0x60   : > { %v218_v39 = vsel %vm217_vm7, %v1755_v33, %v216_v38  ;;  %v1277_v47 = vpack.c.bf16 %v311_v36, %v304_v35  ;;  %v319_v50 = vsub.f32 %v317_v30, %v318_v40  ;;  %v1268_v61 = vpack.c.bf16 %v324_v32, %v317_v30 }
  0x61   : > { %v220_v41 = vsel %vm219_vm8, %v218_v39, 0  ;;  %v306_v48 = vand.u32 4294901760, %v305_v42  ;;  %v313_v49 = vand.u32 4294901760, %v312_v43  ;;  %v326_v51 = vsub.f32 %v324_v32, %v325_v44  ;;  %p1453_p8 = pneg %p1452_p6  ;;  %p1459_p3 = por %p1458_p13, %p1457_p10 }
  0x62   : > { %v291_v45 = vand.u32 4294901760, %v220_v41  ;;  %v1280_v55 = vpack.c.bf16 %v325_v44, %v318_v40  ;;  %v320_v56 = vand.u32 4294901760, %v319_v50  ;;  %v1529_v62 = vmov 1966171168  }
  0x63   : > { %v1259_v54 = vpack.c.bf16 %v313_v49, %v306_v48  ;;  %v327_v57 = vand.u32 4294901760, %v326_v51  ;;  %v710_v63 = vunpack.c.l.s4 %v1529_v62  ;;  %v712_v2 = vlaneseq  ;;  %p1460_p7 = pnand %p1459_p3, %p1453_p8 }
  0x64   : > { %v292_v46 = vsub.f32 %v220_v41, %v291_v45 }
  0x65   : > { %v1262_v59 = vpack.c.bf16 %v327_v57, %v320_v56  ;;  %v711_v3 = vunpack.c.0.s8 %v710_v63  ;;  %v713_v4 = vshrl.u32 %v712_v2, 7 }
  0x66   : > { %v293_v52 = vand.u32 4294901760, %v292_v46 }
  0x67   : > { %v714_v7 = vsub.s32 %v711_v3, %v713_v4 }
  0x68   : > { %1228 = vmatmul.mubr.f32.vlgmr.msra.gmra.mrb[0].mxu0 %v293_v52  ;;  %v294_v53 = vsub.f32 %v292_v46, %v293_v52 }
  0x69   : > { %1278 = vmatpush3.bf16.msra.mxu0 %v1277_v47  ;;  %1238 = vmatprep.mubr.msk.f32.mxu0 %vm1527_vm0, %v1528_v1 }
  0x6a   : > { %v295_v58 = vand.u32 4294901760, %v294_v53  ;;  %1279 = vmatprep.subr.bf16.mxu0 %v1526_v0 }
  0x6c   : > { %1195 = vmatmul.mubr.f32.vlgmr.msra.gmra.mrb[0].mxu1 %v295_v58 }
  0x6d   : > { %1260 = vmatpush3.bf16.msra.mxu1 %v1259_v54  ;;  %1281 = vmatpush3.bf16.msra.mxu0 %v1280_v55 }
  0x6e   : > { %1261 = vmatprep.subr.bf16.mxu1 %v1526_v0  ;;  %1282 = vmatprep.subr.bf16.mxu0 %v1526_v0 }
  0x6f   : > { %1205 = vmatprep.mubr.msk.f32.mxu1 %vm1527_vm0, %v1528_v1 }
  0x70   : > { %1239 = vmatmul.mubr.f32.vlgmr.msra.gmra.mrb[0].mxu0 %v291_v45 }
  0x71   : > { %1263 = vmatpush3.bf16.msra.mxu1 %v1262_v59  ;;  %1284 = vmatpush3.bf16.msra.mxu0 %v1728_v17 }
  0x72   : > { %1264 = vmatprep.subr.bf16.mxu1 %v1526_v0  ;;  %1285 = vmatprep.subr.bf16.mxu0 %v1526_v0 }
  0x73   : > { %1249 = vmatprep.mubr.msk.f32.mxu0 %vm1527_vm0, %v1528_v1 }
  0x74   : > { %1206 = vmatmul.mubr.f32.vlgmr.msra.gmra.mrb[0].mxu1 %v291_v45 }
  0x75   : > { %1266 = vmatpush3.bf16.msra.mxu1 %v1265_v60  ;;  %1287 = vmatpush3.bf16.msra.mxu0 %v1744_v24 }
  0x76   : > { %1267 = vmatprep.subr.bf16.mxu1 %v1526_v0  ;;  %1216 = vmatprep.mubr.msk.f32.mxu1 %vm1527_vm0, %v1528_v1  ;;  %v759_v0 = vsub.s32 0, %v713_v4 }
  0x78   : > { %1250 = vmatmul.mubr.f32.vlgmr.msra.gmra.mrb[0].mxu0 %v291_v45 }
  0x79   : > { %1269 = vmatpush3.bf16.msra.mxu1 %v1268_v61 }
  0x7c   : > { %1217 = vmatmul.mubr.f32.vlgmr.msra.gmra.mrb[0].mxu1 %v292_v46 }
 0x14b   : > { %v703_v5 = vpop.f32.mrb[0].mxu0 }
 0x14c   : > { %v1251_v6 = vpop.f32.mrb[1].mxu0 }
 0x14f   : > { %v468_v8 = vpop.f32.mrb[0].mxu1 }
 0x150   : > { %v1288_v11 = vadd.f32 %v703_v5, %v468_v8  ;;  %v1218_v15 = vpop.f32.mrb[1].mxu1 }
 0x152   : > { %v708_v16 = vcombine.high %v1288_v11, %v1288_v11  ;;  %v715_v17 = vrot.slane %v1288_v11, %v714_v7 }
 0x154   : > { %v722_v20 = vrot.slane %v708_v16, %v714_v7  ;;  %v723_v21 = vcombine.high %v715_v17, %v715_v17  ;;  %v731_v1 = vrot.slane %v715_v17, %v714_v7 }
 0x156   : > { %v724_v22 = vcombine.high %v722_v20, %v722_v20  ;;  %v760_v23 = vrot.slane %v731_v1, %v759_v0  ;;  %v753_v24 = vcombine.high %v731_v1, %v731_v1  ;;  %v745_v25 = vrot.slane %v723_v21, %v714_v7 }
 0x157   : > { %v738_v26 = vrot.slane %v722_v20, %v714_v7 }
 0x158   : > { %v797_v27 = vmul.f32 %v760_v23, %v1712_v9  ;;  %v768_v28 = vrot.slane %v753_v24, %v759_v0  ;;  %v764_v29 = vrot.slane %v745_v25, %v759_v0  ;;  %v755_v30 = vcombine.high %v745_v25, %v745_v25 }
 0x159   : > { %v776_v31 = vrot.slane %v738_v26, %v759_v0  ;;  %v752_v32 = vrot.slane %v724_v22, %v714_v7  ;;  %v754_v34 = vcombine.high %v738_v26, %v738_v26 }
 0x15a   : > { %v805_v35 = vsel %vm219_vm8, %v797_v27, 0.0  ;;  %v799_v36 = vmul.f32 %v768_v28, %v1718_v12  ;;  %v798_v37 = vmul.f32 %v764_v29, %v1715_v10  ;;  %v772_v38 = vrot.slane %v755_v30, %v759_v0 }
 0x15b   : > { %806 = vadd.xlane.f32.xlu0 %v805_v35  ;;  %v780_v41 = vrot.slane %v752_v32, %v759_v0  ;;  %v756_v42 = vcombine.high %v752_v32, %v752_v32  ;;  %v801_v44 = vmul.f32 %v776_v31, %v1724_v14  ;;  %v784_v45 = vrot.slane %v754_v34, %v759_v0 }
 0x15c   : > { %v811_v39 = vsel %vm219_vm8, %v799_v36, 0.0  ;;  %v800_v40 = vmul.f32 %v772_v38, %v1721_v13  ;;  %v808_v43 = vsel %vm219_vm8, %v798_v37, 0.0 }
 0x15d   : > { %812 = vadd.xlane.f32.xlu1 %v811_v39  ;;  %v802_v47 = vmul.f32 %v780_v41, %v1731_v18  ;;  %v788_v48 = vrot.slane %v756_v42, %v759_v0  ;;  %v817_v49 = vsel %vm219_vm8, %v801_v44, 0.0  ;;  %v803_v50 = vmul.f32 %v784_v45, %v1734_v19 }
 0x15e   : > { %v814_v46 = vsel %vm219_vm8, %v800_v40, 0.0 }
 0x15f   : > { %809 = vadd.xlane.f32.xlu0 %v808_v43  ;;  %v820_v51 = vsel %vm219_vm8, %v802_v47, 0.0  ;;  %v804_v52 = vmul.f32 %v788_v48, %v1755_v33  ;;  %v823_v53 = vsel %vm219_vm8, %v803_v50, 0.0 }
 0x161   : > { %815 = vadd.xlane.f32.xlu1 %v814_v46  ;;  %v826_v54 = vsel %vm219_vm8, %v804_v52, 0.0 }
 0x163   : > { %818 = vadd.xlane.f32.xlu0 %v817_v49 }
 0x165   : > { %821 = vadd.xlane.f32.xlu1 %v820_v51 }
 0x167   : > { %824 = vadd.xlane.f32.xlu0 %v823_v53 }
 0x169   : > { %827 = vadd.xlane.f32.xlu1 %v826_v54 }
 0x1e8   : > { %v807_v55 = vpop.xlane.xlu0 %806 }
 0x1e9   : > { %v829_v56 = vrot.slane %v807_v55, 4 }
 0x1ea   : > { %v813_v57 = vpop.xlane.xlu1 %812 }
 0x1eb   : > { %v830_v58 = vmax.f32 %v807_v55, %v829_v56  ;;  %v841_v59 = vrot.slane %v813_v57, 4 }
 0x1ec   : > { %v810_v60 = vpop.xlane.xlu0 %809 }
 0x1ed   : > { %v831_v61 = vrot.slane %v830_v58, 2  ;;  %v842_v62 = vmax.f32 %v813_v57, %v841_v59  ;;  %v835_v63 = vrot.slane %v810_v60, 4 }
 0x1ee   : > { %v816_v2 = vpop.xlane.xlu1 %815 }
 0x1ef   : > { %v832_v3 = vmax.f32 %v830_v58, %v831_v61  ;;  %v843_v4 = vrot.slane %v842_v62, 2  ;;  %v836_v5 = vmax.f32 %v810_v60, %v835_v63  ;;  %v847_v6 = vrot.slane %v816_v2, 4 }
 0x1f0   : > { %v819_v7 = vpop.xlane.xlu0 %818 }
 0x1f1   : > { %v833_v8 = vrot.slane %v832_v3, 1  ;;  %v844_v11 = vmax.f32 %v842_v62, %v843_v4  ;;  %v837_v15 = vrot.slane %v836_v5, 2  ;;  %v848_v16 = vmax.f32 %v816_v2, %v847_v6 }
 0x1f2   : > { %v853_v17 = vrot.slane %v819_v7, 4  ;;  %v822_v0 = vpop.xlane.xlu1 %821 }
 0x1f3   : > { %v834_v20 = vmax.f32 %v832_v3, %v833_v8  ;;  %v845_v21 = vrot.slane %v844_v11, 1  ;;  %v838_v1 = vmax.f32 %v836_v5, %v837_v15  ;;  %v849_v22 = vrot.slane %v848_v16, 2 }
 0x1f4   : > { %v854_v23 = vmax.f32 %v819_v7, %v853_v17  ;;  %v859_v24 = vrot.slane %v822_v0, 4  ;;  %v825_v25 = vpop.xlane.xlu0 %824 }
 0x1f5   : > { %v877_v26 = vsub.f32 %v807_v55, %v834_v20  ;;  %v846_v27 = vmax.f32 %v844_v11, %v845_v21  ;;  %v839_v28 = vrot.slane %v838_v1, 1  ;;  %v850_v29 = vmax.f32 %v848_v16, %v849_v22 }
 0x1f6   : > { %v855_v30 = vrot.slane %v854_v23, 2  ;;  %v860_v31 = vmax.f32 %v822_v0, %v859_v24  ;;  %v865_v32 = vrot.slane %v825_v25, 4  ;;  %v828_v34 = vpop.xlane.xlu1 %827 }
 0x1f7   : > { %v885_v35 = vmul.f32 1.442695, %v877_v26  ;;  %v879_v36 = vsub.f32 %v813_v57, %v846_v27  ;;  %v840_v37 = vmax.f32 %v838_v1, %v839_v28  ;;  %v851_v38 = vrot.slane %v850_v29, 1 }
 0x1f8   : > { %v856_v39 = vmax.f32 %v854_v23, %v855_v30  ;;  %v861_v40 = vrot.slane %v860_v31, 2  ;;  %v866_v41 = vmax.f32 %v825_v25, %v865_v32  ;;  %v871_v42 = vrot.slane %v828_v34, 4 }
 0x1f9   : > { %1360 = vpow2.f32 %v885_v35  ;;  %v889_v43 = vmul.f32 1.442695, %v879_v36  ;;  %v878_v44 = vsub.f32 %v810_v60, %v840_v37  ;;  %v852_v45 = vmax.f32 %v850_v29, %v851_v38 }
 0x1fa   : > { %v857_v46 = vrot.slane %v856_v39, 1  ;;  %v862_v47 = vmax.f32 %v860_v31, %v861_v40  ;;  %v867_v48 = vrot.slane %v866_v41, 2  ;;  %v872_v49 = vmax.f32 %v828_v34, %v871_v42 }
 0x1fb   : > { %1362 = vpow2.f32 %v889_v43  ;;  %v887_v50 = vmul.f32 1.442695, %v878_v44  ;;  %v880_v51 = vsub.f32 %v816_v2, %v852_v45 }
 0x1fc   : > { %v858_v52 = vmax.f32 %v856_v39, %v857_v46  ;;  %v863_v53 = vrot.slane %v862_v47, 1  ;;  %v868_v54 = vmax.f32 %v866_v41, %v867_v48  ;;  %v873_v55 = vrot.slane %v872_v49, 2 }
 0x1fd   : > { %1364 = vpow2.f32 %v887_v50  ;;  %v891_v56 = vmul.f32 1.442695, %v880_v51 }
 0x1fe   : > { %v881_v57 = vsub.f32 %v819_v7, %v858_v52  ;;  %v864_v58 = vmax.f32 %v862_v47, %v863_v53  ;;  %v869_v59 = vrot.slane %v868_v54, 1  ;;  %v874_v61 = vmax.f32 %v872_v49, %v873_v55 }
 0x1ff   : > { %1366 = vpow2.f32 %v891_v56 }
 0x200   : > { %v893_v60 = vmul.f32 1.442695, %v881_v57  ;;  %v882_v62 = vsub.f32 %v822_v0, %v864_v58  ;;  %v870_v63 = vmax.f32 %v868_v54, %v869_v59  ;;  %v875_v3 = vrot.slane %v874_v61, 1 }
 0x202   : > { %1368 = vpow2.f32 %v893_v60  ;;  %v895_v4 = vmul.f32 1.442695, %v882_v62  ;;  %v883_v5 = vsub.f32 %v825_v25, %v870_v63  ;;  %v876_v6 = vmax.f32 %v874_v61, %v875_v3 }
 0x203   : > { %v1805_v2 = vpop.eup %1360 }
 0x204   : > { %v901_v8 = vrot.slane %v1805_v2, 4  ;;  %1370 = vpow2.f32 %v895_v4  ;;  %v897_v11 = vmul.f32 1.442695, %v883_v5  ;;  %v884_v15 = vsub.f32 %v828_v34, %v876_v6 }
 0x205   : > { %v1808_v7 = vpop.eup %1362 }
 0x206   : > { %v902_v16 = vadd.f32 %v1805_v2, %v901_v8  ;;  %v913_v17 = vrot.slane %v1808_v7, 4  ;;  %1372 = vpow2.f32 %v897_v11  ;;  %v899_v0 = vmul.f32 1.442695, %v884_v15 }
 0x207   : > { %v1812_v20 = vpop.eup %1364 }
 0x208   : > { %v903_v21 = vrot.slane %v902_v16, 2  ;;  %v914_v1 = vadd.f32 %v1808_v7, %v913_v17  ;;  %v907_v22 = vrot.slane %v1812_v20, 4  ;;  %1374 = vpow2.f32 %v899_v0 }
 0x209   : > { %v1816_v23 = vpop.eup %1366 }
 0x20a   : > { %v904_v24 = vadd.f32 %v903_v21, %v902_v16  ;;  %v915_v25 = vrot.slane %v914_v1, 2  ;;  %v908_v26 = vadd.f32 %v1812_v20, %v907_v22  ;;  %v919_v27 = vrot.slane %v1816_v23, 4 }
 0x20c   : > { %v1820_v28 = vpop.eup %1368  ;;  %v905_v29 = vrot.slane %v904_v24, 1  ;;  %v916_v30 = vadd.f32 %v915_v25, %v914_v1  ;;  %v909_v31 = vrot.slane %v908_v26, 2  ;;  %v920_v32 = vadd.f32 %v1816_v23, %v919_v27 }
 0x20d   : > { %v925_v34 = vrot.slane %v1820_v28, 4 }
 0x20e   : > { %v1824_v35 = vpop.eup %1370  ;;  %v906_v36 = vadd.f32 %v905_v29, %v904_v24  ;;  %v917_v37 = vrot.slane %v916_v30, 1  ;;  %v910_v38 = vadd.f32 %v909_v31, %v908_v26  ;;  %v921_v39 = vrot.slane %v920_v32, 2 }
 0x20f   : > { %v926_v40 = vadd.f32 %v1820_v28, %v925_v34  ;;  %v931_v41 = vrot.slane %v1824_v35, 4 }
 0x210   : > { %v1828_v42 = vpop.eup %1372  ;;  %1376 = vrcp.f32 %v906_v36  ;;  %v918_v43 = vadd.f32 %v917_v37, %v916_v30  ;;  %v911_v44 = vrot.slane %v910_v38, 1  ;;  %v922_v45 = vadd.f32 %v921_v39, %v920_v32 }
 0x211   : > { %v927_v46 = vrot.slane %v926_v40, 2  ;;  %v932_v47 = vadd.f32 %v1824_v35, %v931_v41  ;;  %v937_v48 = vrot.slane %v1828_v42, 4 }
 0x212   : > { %v1832_v49 = vpop.eup %1374  ;;  %1378 = vrcp.f32 %v918_v43  ;;  %v912_v50 = vadd.f32 %v911_v44, %v910_v38  ;;  %v923_v51 = vrot.slane %v922_v45, 1 }
 0x213   : > { %v928_v52 = vadd.f32 %v927_v46, %v926_v40  ;;  %v933_v53 = vrot.slane %v932_v47, 2  ;;  %v938_v54 = vadd.f32 %v1828_v42, %v937_v48  ;;  %v943_v55 = vrot.slane %v1832_v49, 4 }
 0x214   : > { %1380 = vrcp.f32 %v912_v50  ;;  %v924_v56 = vadd.f32 %v923_v51, %v922_v45 }
 0x215   : > { %v929_v57 = vrot.slane %v928_v52, 1  ;;  %v934_v58 = vadd.f32 %v933_v53, %v932_v47  ;;  %v939_v59 = vrot.slane %v938_v54, 2  ;;  %v944_v61 = vadd.f32 %v1832_v49, %v943_v55 }
 0x216   : > { %1382 = vrcp.f32 %v924_v56 }
 0x217   : > { %v930_v60 = vadd.f32 %v929_v57, %v928_v52  ;;  %v935_v62 = vrot.slane %v934_v58, 1  ;;  %v940_v63 = vadd.f32 %v939_v59, %v938_v54  ;;  %v945_v3 = vrot.slane %v944_v61, 2 }
 0x219   : > { %1384 = vrcp.f32 %v930_v60  ;;  %v936_v4 = vadd.f32 %v935_v62, %v934_v58  ;;  %v941_v5 = vrot.slane %v940_v63, 1  ;;  %v946_v6 = vadd.f32 %v945_v3, %v944_v61 }
 0x21a   : > { %v1377_v8 = vpop.eup %1376 }
 0x21b   : > { %v950_v11 = vmul.f32 %v1377_v8, %v1805_v2  ;;  %1386 = vrcp.f32 %v936_v4  ;;  %v942_v15 = vadd.f32 %v941_v5, %v940_v63  ;;  %v947_v16 = vrot.slane %v946_v6, 1 }
 0x21c   : > { %v1379_v17 = vpop.eup %1378 }
 0x21d   : > { %v965_v0 = vmul.f32 %v950_v11, %v1712_v9  ;;  %v954_v21 = vmul.f32 %v1379_v17, %v1808_v7  ;;  %1388 = vrcp.f32 %v942_v15  ;;  %v948_v1 = vadd.f32 %v947_v16, %v946_v6 }
 0x21e   : > { %v1381_v22 = vpop.eup %1380 }
 0x21f   : > { %v967_v24 = vmul.f32 %v954_v21, %v1718_v12  ;;  %v952_v25 = vmul.f32 %v1381_v22, %v1812_v20  ;;  %1390 = vrcp.f32 %v948_v1  ;;  %v973_v26 = vsel %vm219_vm8, %v965_v0, 0.0 }
 0x220   : > { %v1383_v27 = vpop.eup %1382  ;;  %v974_v2 = vrot.slane %v973_v26, 4 }
 0x221   : > { %v966_v29 = vmul.f32 %v952_v25, %v1715_v10  ;;  %v956_v30 = vmul.f32 %v1383_v27, %v1816_v23  ;;  %v987_v9 = vsel %vm219_vm8, %v967_v24, 0.0 }
 0x222   : > { %v975_v31 = vadd.f32 %v974_v2, %v973_v26  ;;  %v988_v7 = vrot.slane %v987_v9, 4 }
 0x223   : > { %v1385_v32 = vpop.eup %1384  ;;  %v968_v34 = vmul.f32 %v956_v30, %v1721_v13  ;;  %v980_v12 = vsel %vm219_vm8, %v966_v29, 0.0 }
 0x224   : > { %v958_v20 = vmul.f32 %v1385_v32, %v1820_v28  ;;  %v976_v36 = vrot.slane %v975_v31, 2  ;;  %v981_v37 = vrot.slane %v980_v12, 4  ;;  %v989_v38 = vadd.f32 %v988_v7, %v987_v9 }
 0x225   : > { %v1387_v39 = vpop.eup %1386  ;;  %v994_v40 = vsel %vm219_vm8, %v968_v34, 0.0 }
 0x226   : > { %v960_v10 = vmul.f32 %v1387_v39, %v1824_v35  ;;  %v969_v23 = vmul.f32 %v958_v20, %v1724_v14  ;;  %v977_v41 = vadd.f32 %v976_v36, %v975_v31  ;;  %v982_v43 = vadd.f32 %v981_v37, %v980_v12 }
 0x227   : > { %v1389_v44 = vpop.eup %1388  ;;  %v990_v45 = vrot.slane %v989_v38, 2  ;;  %v995_v46 = vrot.slane %v994_v40, 4 }
 0x228   : > { %v962_v13 = vmul.f32 %v1389_v44, %v1828_v42  ;;  %v970_v47 = vmul.f32 %v960_v10, %v1731_v18  ;;  %v983_v28 = vrot.slane %v982_v43, 2  ;;  %v1001_v52 = vsel %vm219_vm8, %v969_v23, 0.0 }
 0x229   : > { %v1391_v48 = vpop.eup %1390  ;;  %v991_v50 = vadd.f32 %v990_v45, %v989_v38  ;;  %v996_v51 = vadd.f32 %v995_v46, %v994_v40  ;;  %v978_v14 = vrot.slane %v977_v41, 1  ;;  %v1002_v57 = vrot.slane %v1001_v52, 4 }
 0x22a   : > { %v964_v53 = vmul.f32 %v1391_v48, %v1832_v49  ;;  %v971_v35 = vmul.f32 %v962_v13, %v1734_v19  ;;  %v984_v54 = vadd.f32 %v983_v28, %v982_v43  ;;  %v1008_v58 = vsel %vm219_vm8, %v970_v47, 0.0 }
 0x22b   : > { %v992_v55 = vrot.slane %v991_v50, 1  ;;  %v997_v56 = vrot.slane %v996_v51, 2  ;;  %v1009_v59 = vrot.slane %v1008_v58, 4  ;;  %v1003_v62 = vadd.f32 %v1002_v57, %v1001_v52 }
 0x22c   : > { %v972_v42 = vmul.f32 %v964_v53, %v1755_v33  ;;  %v985_v18 = vrot.slane %v984_v54, 1  ;;  %v1015_v61 = vsel %vm219_vm8, %v971_v35, 0.0  ;;  %v979_v49 = vadd.f32 %v978_v14, %v977_v41 }
 0x22d   : > { %v998_v60 = vadd.f32 %v997_v56, %v996_v51  ;;  %v1016_v63 = vrot.slane %v1015_v61, 4  ;;  %v1010_v19 = vadd.f32 %v1009_v59, %v1008_v58  ;;  %v1004_v6 = vrot.slane %v1003_v62, 2 }
 0x22e   : > { %v986_v3 = vadd.f32 %v985_v18, %v984_v54  ;;  %v1022_v4 = vsel %vm219_vm8, %v972_v42, 0.0  ;;  %v993_v15 = vadd.f32 %v992_v55, %v991_v50 }
 0x22f   : > { %v999_v5 = vrot.slane %v998_v60, 1  ;;  %v1017_v8 = vadd.f32 %v1016_v63, %v1015_v61  ;;  %v1023_v11 = vrot.slane %v1022_v4, 4  ;;  %v1011_v16 = vrot.slane %v1010_v19, 2 }
 0x230   : > { %v1037_v33 = vsel %vm200_vm1, %v986_v3, %v979_v49  ;;  %v1005_v0 = vadd.f32 %v1004_v6, %v1003_v62 }
 0x231   : > { %v1000_v17 = vadd.f32 %v999_v5, %v998_v60  ;;  %v1018_v21 = vrot.slane %v1017_v8, 2  ;;  %v1024_v1 = vadd.f32 %v1023_v11, %v1022_v4  ;;  %v1012_v22 = vadd.f32 %v1011_v16, %v1010_v19 }
 0x232   : > { %v1038_v24 = vsel %vm203_vm2, %v993_v15, %v1037_v33  ;;  %v1006_v25 = vrot.slane %v1005_v0, 1 }
 0x233   : > { %v1019_v26 = vadd.f32 %v1018_v21, %v1017_v8  ;;  %v1025_v27 = vrot.slane %v1024_v1, 2  ;;  %v1013_v2 = vrot.slane %v1012_v22, 1  ;;  %v1039_v29 = vsel %vm206_vm3, %v1000_v17, %v1038_v24 }
 0x234   : > { %v1007_v30 = vadd.f32 %v1006_v25, %v1005_v0 }
 0x235   : > { %v1020_v9 = vrot.slane %v1019_v26, 1  ;;  %v1026_v31 = vadd.f32 %v1025_v27, %v1024_v1  ;;  %v1014_v7 = vadd.f32 %v1013_v2, %v1012_v22 }
 0x236   : > { %v1040_v12 = vsel %vm209_vm4, %v1007_v30, %v1039_v29 }
 0x237   : > { %v1021_v32 = vadd.f32 %v1020_v9, %v1019_v26  ;;  %v1027_v34 = vrot.slane %v1026_v31, 1  ;;  %v1041_v20 = vsel %vm212_vm5, %v1014_v7, %v1040_v12 }
 0x239   : > { %v1028_v36 = vadd.f32 %v1027_v34, %v1026_v31  ;;  %v1042_v37 = vsel %vm215_vm6, %v1021_v32, %v1041_v20 }
 0x23b   : > { %v1043_v38 = vsel %vm217_vm7, %v1028_v36, %v1042_v37 }
 0x23c   : > { %1045 = vst.msk [vmem:[%s176_s4] sm:$0xff] %vm219_vm8, %v1043_v38 }
 0x23d   : > { %1463 = shalt.err (!%p1460_p7)
}
 0x23e   : > { %s1464_s18 = scalar_lea.hbm %s1872_s23, 128  ;;  %s1468_s26 = scalar_lea.hbm %s1920_s2, 256 }
 0x23f   : > { %p1465_p9 = scmp.ne.s32.totalorder %s1872_s23, %s1464_s18  ;;  %p1469_p5 = scmp.lt.u32.totalorder %s1872_s23, %s1920_s2 }
 0x240   : > { %p1470_p11 = scmp.lt.u32.totalorder %s1468_s26, %s1464_s18  ;;  %p1472_p4 = scmp.lt.u32.totalorder %s1464_s18, %s1872_s23 }
 0x241   : > { %p1466_p1 = pnand %p1465_p9, %p1640_p12 }
 0x242   : > { %p1471_p2 = por %p1470_p11, %p1469_p5 }
 0x243   : > { %p1467_p0 = pneg %p1466_p1 }
 0x244   : > { %p1473_p6 = por %p1472_p4, %p1471_p2 }
 0x246   : > { %p1474_p8 = pnand %p1473_p6, %p1467_p0 }
 0x248   : > { %1477 = shalt.err (!%p1474_p8)
}
 0x249   : > { %1303 = dma.vmem_to_hbm [thread:$0]  (%p1640_p12), %s1874_s5, 128, %s1872_s23, %s1047_s13  }
 0x24a PF: > { %s1072_s30 = sand.u32 1, %s1508_s9   ;;  %p1935_p10 = scmp.ne.s32.totalorder %s1925_s16, 0 }
 0x24b   : > { %p1936_p13 = scmp.ge.s32.totalorder %s1520_s12, 2  ;;  %s1073_s3 = scalar_lea.sflag [#allocation4], %s1072_s30 }
 0x24d   : > { %p1314_p3 = pnand %p1936_p13, %p1935_p10 }
 0x24f   : > { %1503 = dma.done.wait (!%p1314_p3), %s1073_s3, 128  }
 0x250   : > { %1505 = vsyncadd (!%p1314_p3), %s1073_s3, 4294967168  ;;  %p16_p7 = scmp.ge.s32.totalorder %s1602_s21, 4   ;;  %s1937_s9 = smov %s1512_s10 }
 0x251   : > { %s1938_s10 = smov %s1516_s11  ;;  %s1939_s11 = smov %s1636_s8 }
 0x252   : > { %s1940_s12 = smov %s1602_s21  ;;  %18 = sbr.rel (!%p16_p7) target bundleno = 6 (0x6), region = 77 }
 0x259   :  { %1078 = vsyncpa [#allocation3], 1 }
 0x25a   :  { %1080 = vsyncpa [#allocation3 + $0x1], 1 }
 0x25b   :  { %1081 = vsyncpa [#allocation6], 1 }
 0x25c   :  { %1082 = vsyncpa [#allocation4], 1 }
 0x25d   :  { %1084 = vsyncpa [#allocation4 + $0x1], 1 }

</bundles_post_ra>
